<compile_context>
chip_gen: v7x
topology: tpu7x:2x2x1
jax: 0.10.0
libtpu: 0.0.40
codegen_flags: <defaults>
</compile_context>

<pallas_src>
import math
from functools import partial

import jax
import jax.numpy as jnp
from jax import lax
from jax.experimental import pallas as pl
from jax.experimental.pallas import tpu as pltpu


def _round_up(v, m):
    return ((v + m - 1) // m) * m


def _cdiv(a, b):
    return (a + b - 1) // b


def _plain_kernel(x_ref, w_ref, o_ref, *, inv_c, eps):
    # x_ref: (tm, C); w_ref: (1, C) f32.  Two-pass variance (matches torch.var).
    x = x_ref[...].astype(jnp.float32)
    mean = jnp.sum(x, axis=-1, keepdims=True) * inv_c
    d = x - mean
    var = jnp.sum(d * d, axis=-1, keepdims=True) * inv_c
    y = x * lax.rsqrt(var + eps) * w_ref[...]
    o_ref[...] = y.astype(o_ref.dtype)


def _segsum_kernel(x_ref, w_ref, a_ref, at_ref, o_ref, *, inv_c, eps):
    # Lane-dense folded layout: x_ref is (tm, L) with L = k*C (multiple of 128);
    # each physical row holds k logical rows.  a_ref (L, kp) is a 0/1 one-hot
    # segment matrix (kp = k padded to a multiple of 8), so x @ A gives the
    # per-logical-row sums as a tiny (tm, kp) array on the otherwise-idle MXU,
    # and (tm, kp) @ A^T broadcasts per-row scalars back across their C lanes
    # (exact: each A^T column has a single 1).  Padded segments are all-zero
    # columns/rows, so they contribute nothing to the valid output.
    # Factored (skinny) matmuls keep MXU work ~C x below a dense (L,L) segsum.
    x = x_ref[...].astype(jnp.float32)
    a = a_ref[...]
    at = at_ref[...]
    s1 = jnp.dot(x, a, preferred_element_type=jnp.float32)         # (tm, kp)
    mean = s1 * inv_c
    mean_b = jnp.dot(mean, at, preferred_element_type=jnp.float32)  # (tm, L)
    d = x - mean_b
    s2 = jnp.dot(d * d, a, preferred_element_type=jnp.float32)      # (tm, kp)
    inv_std = lax.rsqrt(s2 * inv_c + eps)                           # (tm, kp)
    scale_b = jnp.dot(inv_std, at, preferred_element_type=jnp.float32)
    y = x * scale_b * w_ref[...]
    o_ref[...] = y.astype(o_ref.dtype)


def biasfree_layernorm(x, weight, *, eps=1e-5, target_block_bytes=4 << 20):
    """x: (..., C) array, weight: (C,). Returns same shape/dtype as x."""
    orig_shape = x.shape
    C = orig_shape[-1]
    assert weight.shape == (C,)
    rows = math.prod(orig_shape[:-1])

    w32 = weight.astype(jnp.float32)

    # Fold k logical rows into the lane dim when C is not lane-dense so stores
    # stay unmasked full-lane vst's and all 128 lanes do useful work.
    k = 1
    if C % 128 != 0:
        kk = math.lcm(C, 128) // C
        if kk * C <= 512 and rows % kk == 0:
            k = kk
    L = k * C
    n_rows = rows // k
    use_segsum = k > 1
    kp = _round_up(max(k, 8), 8)  # pad segment count to a sublane multiple

    x2 = x.reshape(n_rows, L)  # contiguous reshape: no HBM copy

    # Row-tile sizing from the actual dtype: ~target_block_bytes of input per
    # block, rounded to a multiple of 32 rows.  Pallas masks the partial tail.
    itemsize = jnp.dtype(x.dtype).itemsize
    row_bytes = L * itemsize
    tm = max(32, (target_block_bytes // row_bytes) // 32 * 32)
    if tm >= n_rows:
        # Degenerate single-block case: split into a few blocks so the
        # BlockSpec pipeline overlaps DMA with compute and both v7x
        # TensorCores get work from the "parallel" axis.
        if n_rows >= 256:
            tm = max(64, _round_up(_cdiv(n_rows, 4), 32))
        elif n_rows >= 128:
            tm = max(64, _round_up(_cdiv(n_rows, 2), 32))
        else:
            tm = n_rows
    grid_m = _cdiv(n_rows, tm)
    grid = (grid_m,)

    inv_c = 1.0 / float(C)

    # Advisory cost hint for XLA's scheduler (includes skinny segsum matmuls).
    ew_flops = 7 * rows * C
    mm_flops = 8 * rows * C * kp if use_segsum else 0
    const_bytes = (L + 2 * L * kp) * 4 if use_segsum else C * 4
    cost = pl.CostEstimate(
        flops=int(ew_flops + mm_flops),
        transcendentals=int(rows),
        bytes_accessed=int(2 * rows * C * itemsize + grid_m * const_bytes),
    )

    x_spec = pl.BlockSpec((tm, L), lambda i: (i, 0))
    o_spec = pl.BlockSpec((tm, L), lambda i: (i, 0))

    if use_segsum:
        wf = jnp.tile(w32, k).reshape(1, L)
        seg_ids = jnp.arange(L, dtype=jnp.int32) // C
        a_mat = (seg_ids[:, None] == jnp.arange(kp, dtype=jnp.int32)[None, :]
                 ).astype(jnp.float32)                 # (L, kp) one-hot
        at_mat = a_mat.T                                # (kp, L)
        kernel = partial(_segsum_kernel, inv_c=inv_c, eps=eps)
        in_specs = [
            x_spec,
            pl.BlockSpec((1, L), lambda i: (0, 0)),
            pl.BlockSpec((L, kp), lambda i: (0, 0)),
            pl.BlockSpec((kp, L), lambda i: (0, 0)),
        ]
        args = (x2, wf, a_mat, at_mat)
    else:
        wf = w32.reshape(1, C)
        kernel = partial(_plain_kernel, inv_c=inv_c, eps=eps)
        in_specs = [x_spec, pl.BlockSpec((1, C), lambda i: (0, 0))]
        args = (x2, wf)

    out = pl.pallas_call(
        kernel,
        out_shape=jax.ShapeDtypeStruct((n_rows, L), x.dtype),
        grid_spec=pltpu.PrefetchScalarGridSpec(
            num_scalar_prefetch=0,
            grid=grid,
            in_specs=in_specs,
            out_specs=o_spec,
        ),
        compiler_params=pltpu.CompilerParams(
            dimension_semantics=("parallel",),
            vmem_limit_bytes=32 << 20,
        ),
        cost_estimate=cost,
    )(*args)

    return out.reshape(orig_shape)


def _reference(x, weight):
    # Pure-JAX reference mirroring the PyTorch forward (two-pass variance).
    xf = x.astype(jnp.float32)
    mu = jnp.mean(xf, axis=-1, keepdims=True)
    var = jnp.mean((xf - mu) ** 2, axis=-1, keepdims=True)
    return (xf / jnp.sqrt(var + 1e-5) * weight.astype(jnp.float32)).astype(x.dtype)


if __name__ == "__main__":
    key = jax.random.PRNGKey(0)
    k1, k2, k3, k4, k5, k6 = jax.random.split(key, 6)

    ok = True

    # Primary case: (B, N, C) = (2, 16, 32); weight = ones (module init).
    # C=32 -> lane-dense folded (segsum) path, single block.
    x = jax.random.normal(k1, (2, 16, 32), dtype=jnp.float32)
    w = jnp.ones((32,), dtype=jnp.float32)
    out = jax.block_until_ready(biasfree_layernorm(x, w))
    ref = _reference(x, w)
    ok &= out.shape == x.shape and out.dtype == x.dtype
    ok &= bool(jnp.allclose(out, ref, atol=1e-5, rtol=1e-5))

    # Lane-aligned case (C multiple of 128 -> plain kernel), random weight.
    x2 = jax.random.normal(k2, (4, 8, 256), dtype=jnp.float32)
    w2 = 0.5 + jax.random.uniform(k3, (256,), dtype=jnp.float32)
    out2 = jax.block_until_ready(biasfree_layernorm(x2, w2))
    ok &= bool(jnp.allclose(out2, _reference(x2, w2), atol=1e-5, rtol=1e-5))

    # Segsum path with multiple blocks + masked partial tail block.
    x3 = jax.random.normal(k4, (2, 100, 32), dtype=jnp.float32)
    w3 = jnp.ones((32,), dtype=jnp.float32)
    out3 = jax.block_until_ready(
        biasfree_layernorm(x3, w3, target_block_bytes=16 * 1024)
    )
    ok &= bool(jnp.allclose(out3, _reference(x3, w3), atol=1e-5, rtol=1e-5))

    # bf16 input: dtype-aware tile sizing + degenerate-case split (grid of 2).
    x4 = jax.random.normal(k5, (2, 64, 384), dtype=jnp.bfloat16)
    w4 = 0.5 + jax.random.uniform(k6, (384,), dtype=jnp.float32)
    out4 = jax.block_until_ready(biasfree_layernorm(x4, w4))
    ok &= out4.dtype == x4.dtype
    ok &= bool(
        jnp.allclose(
            out4.astype(jnp.float32),
            _reference(x4, w4).astype(jnp.float32),
            atol=2e-2,
            rtol=2e-2,
        )
    )

    assert ok
    print("KERNEL_OK")
</pallas_src>

<mosaic_0001>
module attributes {stable_mosaic.version = 11 : i64} {
  func.func @_segsum_kernel(%arg0: i32, %arg1: memref<8x128xf32, #tpu.memory_space<vmem>>, %arg2: memref<1x128xf32, #tpu.memory_space<vmem>>, %arg3: memref<128x8xf32, #tpu.memory_space<vmem>>, %arg4: memref<8x128xf32, #tpu.memory_space<vmem>>, %arg5: memref<8x128xf32, #tpu.memory_space<vmem>>) attributes {dimension_semantics = [#tpu.dimension_semantics<parallel>], iteration_bounds = array<i64: 1>, scalar_prefetch = 0 : i64, scratch_operands = 0 : i64, tpu.core_type = #tpu.core_type<tc>, window_params = [{transform_indices = @transform_0, window_bounds = array<i64: 8, 128>}, {pipeline_mode = #tpu.pipeline_mode<synchronous>, transform_indices = @transform_1, window_bounds = array<i64: 1, 128>}, {pipeline_mode = #tpu.pipeline_mode<synchronous>, transform_indices = @transform_2, window_bounds = array<i64: 128, 8>}, {pipeline_mode = #tpu.pipeline_mode<synchronous>, transform_indices = @transform_3, window_bounds = array<i64: 8, 128>}, {transform_indices = @transform_4, window_bounds = array<i64: 8, 128>}]} {
    %c0 = arith.constant 0 : index
    %c0_0 = arith.constant 0 : index
    %0 = vector.load %arg1[%c0, %c0_0] : memref<8x128xf32, #tpu.memory_space<vmem>>, vector<8x128xf32>
    %c0_1 = arith.constant 0 : index
    %c0_2 = arith.constant 0 : index
    %1 = vector.load %arg3[%c0_1, %c0_2] : memref<128x8xf32, #tpu.memory_space<vmem>>, vector<128x8xf32>
    %c0_3 = arith.constant 0 : index
    %c0_4 = arith.constant 0 : index
    %2 = vector.load %arg4[%c0_3, %c0_4] : memref<8x128xf32, #tpu.memory_space<vmem>>, vector<8x128xf32>
    %cst = arith.constant dense<0.000000e+00> : vector<8x8xf32>
    %3 = tpu.matmul %0, %1, %cst {dimension_numbers = #tpu.dot_dimension_numbers<[1], [0], [0], [1], [0, 0, 1, 1], [], []>} : vector<8x128xf32>, vector<128x8xf32>, vector<8x8xf32> -> vector<8x8xf32>
    %cst_5 = arith.constant 3.125000e-02 : f32
    %4 = vector.broadcast %cst_5 : f32 to vector<8x8xf32>
    %5 = arith.mulf %3, %4 : vector<8x8xf32>
    %cst_6 = arith.constant dense<0.000000e+00> : vector<8x128xf32>
    %6 = tpu.matmul %5, %2, %cst_6 {dimension_numbers = #tpu.dot_dimension_numbers<[1], [0], [0], [1], [0, 0, 1, 1], [], []>} : vector<8x8xf32>, vector<8x128xf32>, vector<8x128xf32> -> vector<8x128xf32>
    %7 = arith.subf %0, %6 : vector<8x128xf32>
    %8 = arith.mulf %7, %7 : vector<8x128xf32>
    %cst_7 = arith.constant dense<0.000000e+00> : vector<8x8xf32>
    %9 = tpu.matmul %8, %1, %cst_7 {dimension_numbers = #tpu.dot_dimension_numbers<[1], [0], [0], [1], [0, 0, 1, 1], [], []>} : vector<8x128xf32>, vector<128x8xf32>, vector<8x8xf32> -> vector<8x8xf32>
    %cst_8 = arith.constant 3.125000e-02 : f32
    %10 = vector.broadcast %cst_8 : f32 to vector<8x8xf32>
    %11 = arith.mulf %9, %10 : vector<8x8xf32>
    %cst_9 = arith.constant 9.99999974E-6 : f32
    %12 = vector.broadcast %cst_9 : f32 to vector<8x8xf32>
    %13 = arith.addf %11, %12 : vector<8x8xf32>
    %14 = math.rsqrt %13 : vector<8x8xf32>
    %cst_10 = arith.constant dense<0.000000e+00> : vector<8x128xf32>
    %15 = tpu.matmul %14, %2, %cst_10 {dimension_numbers = #tpu.dot_dimension_numbers<[1], [0], [0], [1], [0, 0, 1, 1], [], []>} : vector<8x8xf32>, vector<8x128xf32>, vector<8x128xf32> -> vector<8x128xf32>
    %16 = arith.mulf %0, %15 : vector<8x128xf32>
    %c0_11 = arith.constant 0 : index
    %c0_12 = arith.constant 0 : index
    %17 = vector.load %arg2[%c0_11, %c0_12] : memref<1x128xf32, #tpu.memory_space<vmem>>, vector<1x128xf32>
    %18 = vector.broadcast %17 : vector<1x128xf32> to vector<8x128xf32>
    %19 = arith.mulf %16, %18 : vector<8x128xf32>
    %c0_13 = arith.constant 0 : index
    %c0_14 = arith.constant 0 : index
    %20 = vector.load %arg5[%c0_13, %c0_14] : memref<8x128xf32, #tpu.memory_space<vmem>>, vector<8x128xf32>
    tpu.vector_store %arg5[%c0_13, %c0_14], %19 {strides = array<i32>} : memref<8x128xf32, #tpu.memory_space<vmem>>, vector<8x128xf32>,
    return
  }
  func.func @transform_0(%arg0: i32) -> (i32, i32) {
    %c0_i32 = arith.constant 0 : i32
    %c0_i32_0 = arith.constant 0 : i32
    return %arg0, %c0_i32 : i32, i32
  }
  func.func @transform_1(%arg0: i32) -> (i32, i32) {
    %c0_i32 = arith.constant 0 : i32
    %c0_i32_0 = arith.constant 0 : i32
    %c0_i32_1 = arith.constant 0 : i32
    return %c0_i32, %c0_i32_0 : i32, i32
  }
  func.func @transform_2(%arg0: i32) -> (i32, i32) {
    %c0_i32 = arith.constant 0 : i32
    %c0_i32_0 = arith.constant 0 : i32
    %c0_i32_1 = arith.constant 0 : i32
    return %c0_i32, %c0_i32_0 : i32, i32
  }
  func.func @transform_3(%arg0: i32) -> (i32, i32) {
    %c0_i32 = arith.constant 0 : i32
    %c0_i32_0 = arith.constant 0 : i32
    %c0_i32_1 = arith.constant 0 : i32
    return %c0_i32, %c0_i32_0 : i32, i32
  }
  func.func @transform_4(%arg0: i32) -> (i32, i32) {
    %c0_i32 = arith.constant 0 : i32
    %c0_i32_0 = arith.constant 0 : i32
    return %arg0, %c0_i32 : i32, i32
  }
}

</mosaic_0001>

<bundles_post_ra>
// kernel: tpu_custom_call.1
= control target key start
LH: loop header
LB: loop body
LE: loop exit
PB: predicated region body
PF: predicated region fallthrough
CT: control target
= control target key end

     0   :  { %v552_v3 = vmov 0.0|0.0   ;;  %vm553_vm0 = vmmov 0   ;;  %v554_v6 = vmov 0.0   ;;  %s672_s0 = inlined_call_operand.vmem [shape: f32[8,128], index: 0, kind: input, shape index: {}]   ;;  %s673_s1 = inlined_call_operand.vmem [shape: f32[1,128], index: 1, kind: input, shape index: {}]   ;;  %s674_s2 = inlined_call_operand.vmem [shape: f32[128,8], index: 2, kind: input, shape index: {}]   ;;  %s675_s3 = inlined_call_operand.vmem [shape: f32[8,128], index: 3, kind: input, shape index: {}]   ;;  %s676_s4 = inlined_call_operand.hbm [shape: f32[8,128], index: 4, kind: output, shape index: {}]  }
   0x1   :  { %v19_v0 = vld [vmem:[%s674_s2] sm:$0xff]  ;;  %v20_v1 = vld [vmem:[%s674_s2 + $0x8] sm:$0xff]  ;;  %v21_v2 = vld [vmem:[%s674_s2 + $0x10] sm:$0xff]  ;;  %474 = vmatprep.subr.bf16.mxu0 %v552_v3  ;;  %426 = vmatprep.mubr.msk.f32.mxu0 %vm553_vm0, %v554_v6 }
   0x2   :  { %v475_v4 = vpack.c.bf16 %v20_v1, %v19_v0  ;;  %v22_v5 = vld [vmem:[%s674_s2 + $0x18] sm:$0xff]  ;;  %429 = vmatprep.subr.mxu1 %v554_v6  ;;  %431 = vmatprep.mubr.msk.f32.mxu1 %vm553_vm0, %v554_v6  ;;  %v23_v8 = vld [vmem:[%s674_s2 + $0x20] sm:$0xff]  ;;  %v24_v9 = vld [vmem:[%s674_s2 + $0x28] sm:$0xff] }
   0x3   :  { %v478_v7 = vpack.c.bf16 %v22_v5, %v21_v2 }
   0x4   :  { %476 = vmatpush3.bf16.msra.mxu0 %v475_v4 }
   0x5   :  { %477 = vmatprep.subr.bf16.mxu0 %v552_v3 }
   0x6   :  { %9 = vsyncpa [#allocation3], 0  ;;  %v481_v10 = vpack.c.bf16 %v24_v9, %v23_v8  ;;  %v25_v11 = vld [vmem:[%s674_s2 + $0x30] sm:$0xff]  ;;  %v26_v12 = vld [vmem:[%s674_s2 + $0x38] sm:$0xff]  ;;  %vm107_vm1 = vcmask 64512  }
   0x7   :  { %v484_v13 = vpack.c.bf16 %v26_v12, %v25_v11  ;;  %v27_v14 = vld [vmem:[%s674_s2 + $0x40] sm:$0xff]  ;;  %v28_v15 = vld [vmem:[%s674_s2 + $0x48] sm:$0xff]  ;;  %v29_v17 = vld [vmem:[%s674_s2 + $0x50] sm:$0xff] }
   0x8   :  { %479 = vmatpush3.bf16.msra.mxu0 %v478_v7  ;;  %v487_v16 = vpack.c.bf16 %v28_v15, %v27_v14  ;;  %v30_v18 = vld [vmem:[%s674_s2 + $0x58] sm:$0xff]  ;;  %v31_v20 = vld [vmem:[%s674_s2 + $0x60] sm:$0xff]  ;;  %v32_v21 = vld [vmem:[%s674_s2 + $0x68] sm:$0xff] }
   0x9   :  { %480 = vmatprep.subr.bf16.mxu0 %v552_v3  ;;  %v490_v19 = vpack.c.bf16 %v30_v18, %v29_v17  ;;  %v493_v22 = vpack.c.bf16 %v32_v21, %v31_v20  ;;  %v33_v23 = vld [vmem:[%s674_s2 + $0x70] sm:$0xff]  ;;  %v34_v24 = vld [vmem:[%s674_s2 + $0x78] sm:$0xff]  ;;  %v18_v26 = vld [vmem:[%s672_s0] sm:$0xff] }
   0xa   :  { %v496_v25 = vpack.c.bf16 %v34_v24, %v33_v23  ;;  %v35_v27 = vld [vmem:[%s675_s3] sm:$0xff]  ;;  %s555_s3 = smov [#allocation2]  }
   0xb   :  { %430 = vmatpush3.msra.mxu1 %v35_v27  ;;  %v355_v41 = vld [vmem:[%s673_s1] ss:$0 sm:$0xff]  ;;  %s345_s25 = sshll.u32 %s555_s3, 4  ;;  %s346_s25 = int_to_ptr.vmem [resolvable:$true] %s345_s25 }
   0xc   :  { %482 = vmatpush3.bf16.msra.mxu0 %v481_v10  ;;  %498 = vmatprep.subr.bf16.mxu1 %v552_v3  ;;  %s528_s26 = scalar_lea.vmem %s346_s25, 128  ;;  %p533_p1 = scmp.lt.s32.totalorder %s346_s25, %s346_s25 }
   0xd   :  { %483 = vmatprep.subr.bf16.mxu0 %v552_v3  ;;  %p529_p0 = scmp.ne.s32.totalorder %s346_s25, %s528_s26  ;;  %p534_p2 = scmp.lt.s32.totalorder %s528_s26, %s528_s26 }
   0xf   :  { %p535_p3 = por %p534_p2, %p533_p1 }
  0x10   :  { %485 = vmatpush3.bf16.msra.mxu0 %v484_v13 }
  0x11   :  { %486 = vmatprep.subr.bf16.mxu0 %v552_v3  ;;  %p536_p4 = pnand %p535_p3, %p529_p0 }
  0x14   :  { %488 = vmatpush3.bf16.msra.mxu0 %v487_v16 }
  0x15   :  { %489 = vmatprep.subr.bf16.mxu0 %v552_v3 }
  0x18   :  { %491 = vmatpush3.bf16.msra.mxu0 %v490_v19 }
  0x19   :  { %492 = vmatprep.subr.bf16.mxu0 %v552_v3 }
  0x1c   :  { %494 = vmatpush3.bf16.msra.mxu0 %v493_v22 }
  0x1d   :  { %495 = vmatprep.subr.bf16.mxu0 %v552_v3 }
  0x20   :  { %497 = vmatpush3.bf16.msra.mxu0 %v496_v25 }
  0x21   :  { %469 = vmatprep.subr.mxu0 %v554_v6 }
  0x23   :  { %427 = vmatmul.mubr.f32.vlgmr.msra.gmra.mrb[0].mxu0 %v18_v26 }
  0x24   :  { %471 = vmatprep.mubr.msk.f32.mxu0 %vm553_vm0, %v554_v6  ;;  %470 = vmatpush3.msra.mxu0 %v35_v27 }
  0xf6   :  { %v102_v28 = vpop.f32.mrb[0].mxu0 }
  0xf7   :  { %v106_v29 = vmul.f32 0.03125, %v102_v28  ;;  %v428_v30 = vpop.f32.mrb[1].mxu0 }
  0xf9   :  { %432 = vmatmul.mubr.msk.f32.vlgmr.msra.gmra.mrb[0].mxu1 %vm107_vm1, %v106_v29 }
  0xfa   :  { %500 = vmatpush3.bf16.msra.mxu1 %v475_v4  ;;  %466 = vmatprep.mubr.msk.f32.mxu1 %vm553_vm0, %v554_v6 }
  0xfb   :  { %501 = vmatprep.subr.bf16.mxu1 %v552_v3 }
  0xfe   :  { %503 = vmatpush3.bf16.msra.mxu1 %v478_v7 }
  0xff   :  { %504 = vmatprep.subr.bf16.mxu1 %v552_v3 }
 0x102   :  { %506 = vmatpush3.bf16.msra.mxu1 %v481_v10 }
 0x103   :  { %507 = vmatprep.subr.bf16.mxu1 %v552_v3 }
 0x106   :  { %509 = vmatpush3.bf16.msra.mxu1 %v484_v13 }
 0x107   :  { %510 = vmatprep.subr.bf16.mxu1 %v552_v3 }
 0x10a   :  { %512 = vmatpush3.bf16.msra.mxu1 %v487_v16 }
 0x10b   :  { %513 = vmatprep.subr.bf16.mxu1 %v552_v3 }
 0x10e   :  { %515 = vmatpush3.bf16.msra.mxu1 %v490_v19 }
 0x10f   :  { %516 = vmatprep.subr.bf16.mxu1 %v552_v3 }
 0x112   :  { %518 = vmatpush3.bf16.msra.mxu1 %v493_v22 }
 0x113   :  { %519 = vmatprep.subr.bf16.mxu1 %v552_v3 }
 0x116   :  { %521 = vmatpush3.bf16.msra.mxu1 %v496_v25 }
 0x1cc   :  { %v177_v31 = vpop.f32.mrb[0].mxu1 }
 0x1cd   :  { %v181_v32 = vsub.f32 %v18_v26, %v177_v31  ;;  %v433_v33 = vpop.f32.mrb[1].mxu1 }
 0x1cf   :  { %v182_v34 = vmul.f32 %v181_v32, %v181_v32 }
 0x1d1   :  { %467 = vmatmul.mubr.f32.vlgmr.msra.gmra.mrb[2].mxu1 %v182_v34 }
 0x2a4   :  { %v249_v35 = vpop.f32.mrb[2].mxu1 }
 0x2a5   :  { %v253_v36 = vmul.f32 0.03125, %v249_v35  ;;  %v468_v37 = vpop.f32.mrb[3].mxu1 }
 0x2a7   :  { %v254_v38 = vadd.f32 1e-05, %v253_v36 }
 0x2a9   :  { %526 = vrsqrt.f32 %v254_v38 }
 0x2b3   :  { %v527_v39 = vpop.eup %526 }
 0x2b4   :  { %472 = vmatmul.mubr.msk.f32.vlgmr.msra.gmra.mrb[2].mxu0 %vm107_vm1, %v527_v39 }
 0x387   :  { %v325_v40 = vpop.f32.mrb[2].mxu0 }
 0x388   :  { %v329_v42 = vmul.f32 %v325_v40, %v18_v26  ;;  %v473_v43 = vpop.f32.mrb[3].mxu0 }
 0x38a   :  { %v337_v44 = vmul.f32 %v355_v41, %v329_v42 }
 0x38c   :  { %338 = vst [vmem:[#allocation2] sm:$0xff] %v337_v44 }
 0x38d   :  { %539 = shalt.err (!%p536_p4)
}
 0x38e   :  { %s540_s29 = scalar_lea.hbm %s676_s4, 128 }
 0x38f   :  { %p541_p5 = scmp.ne.s32.totalorder %s676_s4, %s540_s29  ;;  %p544_p6 = scmp.lt.u32.totalorder %s540_s29, %s676_s4 }
 0x391   :  { %p546_p7 = pnand %p544_p6, %p541_p5 }
 0x393   :  { %549 = shalt.err (!%p546_p7)
}
 0x394   :  { %348 = dma.vmem_to_hbm [thread:$0]  %s346_s25, 128, %s676_s4, [#allocation3]  }
 0x395   :  { %550 = dma.done.wait [#allocation3], 128  }
 0x396   :  { %551 = vsyncadd [#allocation3], 4294967168 }
 0x397   :  { %352 = vsyncpa [#allocation3], 1 }

</bundles_post_ra>
